<compile_context>
chip_gen: v5e
topology: v5e:2x2
jax: 0.10.0
libtpu: 0.0.40
codegen_flags: <defaults>
</compile_context>

<pallas_src>
import numpy as np
import jax
import jax.numpy as jnp
from jax import lax
from jax.experimental import pallas as pl
from jax.experimental.pallas import tpu as pltpu


def _gaussian_kernel(size, sigma):
    """Exact reproduction of WavesModel.gaussian_kernel (note linspace(-2, 1, 3))."""
    lo = (-size) // 2            # -size // 2 in the torch code == (-size)//2
    hi = size // 2
    xs = np.linspace(lo, hi, size)
    gx = np.tile(xs.reshape(1, -1), (size, 1))
    gy = gx.T
    k = np.exp(-(gx ** 2 + gy ** 2) / (2.0 * sigma ** 2))
    return k / k.sum()


def _build_operator(H, W, threshold, ksize, sigma):
    """Host (numpy, f64) build of the composite linear operator.

    Returns (LT_off, dvec) such that for a row-major flattened image x (H*W,):
        result = x * dvec + x @ LT_off
    equals 0.5 * real(ifft2(ifftshift(mask * fftshift(fft2(X))))) +
           0.5 * reflect_pad_conv3x3_gaussian(X).
    """
    P = H * W
    yy = np.linspace(-1.0, 1.0, H).reshape(H, 1)      # torch.meshgrid 'ij'
    xx = np.linspace(-1.0, 1.0, W).reshape(1, W)
    mask = (np.sqrt(xx ** 2 + yy ** 2) > threshold).astype(np.float64)

    # Responses of the pipeline to every pixel basis image (exact, f64).
    basis = np.eye(P, dtype=np.float64).reshape(P, H, W)
    F = np.fft.fft2(basis, axes=(-2, -1))
    F = np.fft.fftshift(F, axes=(-2, -1)) * mask[None]
    F = np.fft.ifftshift(F, axes=(-2, -1))
    filt = np.fft.ifft2(F, axes=(-2, -1)).real        # (P, H, W)

    gk = _gaussian_kernel(ksize, sigma).astype(np.float64)
    pad = ksize // 2
    bp = np.pad(basis, ((0, 0), (pad, pad), (pad, pad)), mode="reflect")
    sm = np.zeros_like(basis)
    for di in range(ksize):
        for dj in range(ksize):
            sm += gk[di, dj] * bp[:, di:di + H, dj:dj + W]

    res = 0.5 * filt + 0.5 * sm                       # (P, H, W)
    LT = res.reshape(P, P)                            # out_row = x_row @ LT
    dvec = np.diag(LT).copy()
    LT_off = LT - np.diag(dvec)
    return LT_off.astype(np.float32), dvec.reshape(1, P).astype(np.float32)


def make_waves_kernel(B, C, H, W, strength=1, kernel_size=3, sigma=1.0):
    threshold = 0.1 * strength
    P = H * W
    N = B * C
    n_elems = B * H * W
    inv_n = 1.0 / n_elems
    inv_nm1 = 1.0 / (n_elems - 1)                     # unbiased std (torch default)

    lt_off_np, dvec_np = _build_operator(H, W, threshold, kernel_size, sigma)
    lt_off = jnp.asarray(lt_off_np)                   # (P, P) f32, ~256 KiB at 16x16
    dvec = jnp.asarray(dvec_np)                       # (1, P) f32

    def kernel(x_ref, lt_ref, d_ref, o_ref):
        xf = x_ref[...]                               # (N, P) f32, lane-dense

        # --- filtered + smoothed result: exact-f32 diagonal + bf16 MXU rest ---
        res = xf * d_ref[...] + jnp.dot(
            xf, lt_ref[...], preferred_element_type=jnp.float32)   # (N, P)

        # --- per-row sums / sums of squares (lane reductions, keep 2-D) -------
        sx = jnp.sum(xf, axis=1, keepdims=True)                    # (N, 1)
        qx = jnp.sum(xf * xf, axis=1, keepdims=True)
        sr = jnp.sum(res, axis=1, keepdims=True)
        qr = jnp.sum(res * res, axis=1, keepdims=True)

        # --- aggregate batch rows per channel (row index = b*C + c) -----------
        def agg(v):                                                # (N,1) -> (C,1)
            a = v[0:C]
            for b in range(1, B):
                a = a + v[b * C:(b + 1) * C]
            return a

        ch_sx, ch_qx = agg(sx), agg(qx)
        ch_sr, ch_qr = agg(sr), agg(qr)

        mean_x = ch_sx * inv_n                                     # (C, 1)
        mean_r = ch_sr * inv_n
        var_x = (ch_qx - ch_sx * mean_x) * inv_nm1                 # unbiased
        var_r = (ch_qr - ch_sr * mean_r) * inv_nm1
        scale = jnp.sqrt(var_x) * lax.rsqrt(var_r)                 # EUP rsqrt
        shift = mean_x - mean_r * scale

        # --- normalize + clamp, lane-dense stores ------------------------------
        for b in range(B):                                         # tiny static loop
            blk = res[b * C:(b + 1) * C, :]                        # (C, P)
            o_ref[b * C:(b + 1) * C, :] = jnp.clip(
                blk * scale + shift, 0.0, 1.0)

    fn = pl.pallas_call(
        kernel,
        out_shape=jax.ShapeDtypeStruct((N, P), jnp.float32),
        grid=(1,),
        in_specs=[
            pl.BlockSpec((N, P), lambda i: (0, 0)),
            pl.BlockSpec((P, P), lambda i: (0, 0)),
            pl.BlockSpec((1, P), lambda i: (0, 0)),
        ],
        out_specs=pl.BlockSpec((N, P), lambda i: (0, 0)),
        compiler_params=pltpu.CompilerParams(dimension_semantics=("arbitrary",)),
    )

    @jax.jit
    def forward(x_nchw):
        x2 = jnp.asarray(x_nchw, jnp.float32).reshape(N, P)   # bitcast, no HBM pass
        out2 = fn(x2, lt_off, dvec)
        return out2.reshape(B, C, H, W)                       # bitcast

    return forward


def reference(x, strength=1, kernel_size=3, sigma=1.0):
    """Plain-JAX replica of the PyTorch forward (for a sanity check)."""
    x = jnp.asarray(x, jnp.float32)
    B, C, H, W = x.shape
    threshold = 0.1 * strength
    yy = jnp.linspace(-1.0, 1.0, H)[:, None]
    xx = jnp.linspace(-1.0, 1.0, W)[None, :]
    mask = (jnp.sqrt(xx ** 2 + yy ** 2) > threshold).astype(jnp.float32)

    xf = jnp.fft.fft2(x, axes=(-2, -1))
    xf = jnp.fft.fftshift(xf, axes=(-2, -1)) * mask
    xf = jnp.fft.ifftshift(xf, axes=(-2, -1))
    x_filtered = jnp.real(jnp.fft.ifft2(xf, axes=(-2, -1)))

    gk = np.asarray(_gaussian_kernel(kernel_size, sigma), dtype=np.float32)
    p = kernel_size // 2
    xp = jnp.pad(x, ((0, 0), (0, 0), (p, p), (p, p)), mode="reflect")
    sm = jnp.zeros_like(x)
    for di in range(kernel_size):
        for dj in range(kernel_size):
            sm = sm + float(gk[di, dj]) * xp[:, :, di:di + H, dj:dj + W]

    res = 0.5 * x_filtered + 0.5 * sm
    outs = []
    for c in range(C):
        xo, xr = x[:, c], res[:, c]
        mo, mr = jnp.mean(xo), jnp.mean(xr)
        so, sr = jnp.std(xo, ddof=1), jnp.std(xr, ddof=1)
        outs.append((xr - mr) * (so / sr) + mo)
    return jnp.clip(jnp.stack(outs, axis=1), 0.0, 1.0)


if __name__ == "__main__":
    B, C, H, W = 2, 4, 16, 16
    key = jax.random.PRNGKey(0)
    x = jax.random.uniform(key, (B, C, H, W), dtype=jnp.float32)

    fwd = make_waves_kernel(B, C, H, W, strength=1)
    out = jax.block_until_ready(fwd(x))
    ref = jax.block_until_ready(reference(x, strength=1))

    assert out.shape == (B, C, H, W) and out.dtype == jnp.float32
    assert bool(jnp.all(jnp.isfinite(out)))
    max_err = float(jnp.max(jnp.abs(out - ref)))
    assert max_err < 1e-2, f"mismatch vs reference, max_err={max_err}"
    print("KERNEL_OK")
</pallas_src>

<mosaic_0001>
module attributes {stable_mosaic.version = 11 : i64} {
  func.func @kernel(%arg0: i32, %arg1: memref<8x256xf32, #tpu.memory_space<vmem>>, %arg2: memref<256x256xf32, #tpu.memory_space<vmem>>, %arg3: memref<1x256xf32, #tpu.memory_space<vmem>>, %arg4: memref<8x256xf32, #tpu.memory_space<vmem>>) attributes {dimension_semantics = [#tpu.dimension_semantics<arbitrary>], iteration_bounds = array<i64: 1>, scalar_prefetch = 0 : i64, scratch_operands = 0 : i64, tpu.core_type = #tpu.core_type<tc>, window_params = [{pipeline_mode = #tpu.pipeline_mode<synchronous>, transform_indices = @transform_0, window_bounds = array<i64: 8, 256>}, {pipeline_mode = #tpu.pipeline_mode<synchronous>, transform_indices = @transform_1, window_bounds = array<i64: 256, 256>}, {pipeline_mode = #tpu.pipeline_mode<synchronous>, transform_indices = @transform_2, window_bounds = array<i64: 1, 256>}, {pipeline_mode = #tpu.pipeline_mode<synchronous>, transform_indices = @transform_3, window_bounds = array<i64: 8, 256>}]} {
    %c0 = arith.constant 0 : index
    %c0_0 = arith.constant 0 : index
    %0 = vector.load %arg1[%c0, %c0_0] : memref<8x256xf32, #tpu.memory_space<vmem>>, vector<8x256xf32>
    %c0_1 = arith.constant 0 : index
    %c0_2 = arith.constant 0 : index
    %1 = vector.load %arg3[%c0_1, %c0_2] : memref<1x256xf32, #tpu.memory_space<vmem>>, vector<1x256xf32>
    %2 = vector.broadcast %1 : vector<1x256xf32> to vector<8x256xf32>
    %3 = arith.mulf %0, %2 : vector<8x256xf32>
    %c0_3 = arith.constant 0 : index
    %c0_4 = arith.constant 0 : index
    %4 = vector.load %arg2[%c0_3, %c0_4] : memref<256x256xf32, #tpu.memory_space<vmem>>, vector<256x256xf32>
    %cst = arith.constant dense<0.000000e+00> : vector<8x256xf32>
    %5 = tpu.matmul %0, %4, %cst {dimension_numbers = #tpu.dot_dimension_numbers<[1], [0], [0], [1], [0, 0, 1, 1], [], []>} : vector<8x256xf32>, vector<256x256xf32>, vector<8x256xf32> -> vector<8x256xf32>
    %6 = arith.addf %3, %5 : vector<8x256xf32>
    %cst_5 = arith.constant dense<0.000000e+00> : vector<8xf32>
    %7 = vector.multi_reduction <add>, %0, %cst_5 [1] : vector<8x256xf32> to vector<8xf32>
    %8 = vector.shape_cast %7 : vector<8xf32> to vector<8x1xf32>
    %9 = arith.mulf %0, %0 : vector<8x256xf32>
    %cst_6 = arith.constant dense<0.000000e+00> : vector<8xf32>
    %10 = vector.multi_reduction <add>, %9, %cst_6 [1] : vector<8x256xf32> to vector<8xf32>
    %11 = vector.shape_cast %10 : vector<8xf32> to vector<8x1xf32>
    %cst_7 = arith.constant dense<0.000000e+00> : vector<8xf32>
    %12 = vector.multi_reduction <add>, %6, %cst_7 [1] : vector<8x256xf32> to vector<8xf32>
    %13 = vector.shape_cast %12 : vector<8xf32> to vector<8x1xf32>
    %14 = arith.mulf %6, %6 : vector<8x256xf32>
    %cst_8 = arith.constant dense<0.000000e+00> : vector<8xf32>
    %15 = vector.multi_reduction <add>, %14, %cst_8 [1] : vector<8x256xf32> to vector<8xf32>
    %16 = vector.shape_cast %15 : vector<8xf32> to vector<8x1xf32>
    %17 = vector.extract_strided_slice %8 {offsets = [0, 0], sizes = [4, 1], strides = [1, 1]} : vector<8x1xf32> to vector<4x1xf32>
    %18 = vector.extract_strided_slice %8 {offsets = [4, 0], sizes = [4, 1], strides = [1, 1]} : vector<8x1xf32> to vector<4x1xf32>
    %19 = arith.addf %17, %18 : vector<4x1xf32>
    %20 = vector.extract_strided_slice %11 {offsets = [0, 0], sizes = [4, 1], strides = [1, 1]} : vector<8x1xf32> to vector<4x1xf32>
    %21 = vector.extract_strided_slice %11 {offsets = [4, 0], sizes = [4, 1], strides = [1, 1]} : vector<8x1xf32> to vector<4x1xf32>
    %22 = arith.addf %20, %21 : vector<4x1xf32>
    %23 = vector.extract_strided_slice %13 {offsets = [0, 0], sizes = [4, 1], strides = [1, 1]} : vector<8x1xf32> to vector<4x1xf32>
    %24 = vector.extract_strided_slice %13 {offsets = [4, 0], sizes = [4, 1], strides = [1, 1]} : vector<8x1xf32> to vector<4x1xf32>
    %25 = arith.addf %23, %24 : vector<4x1xf32>
    %26 = vector.extract_strided_slice %16 {offsets = [0, 0], sizes = [4, 1], strides = [1, 1]} : vector<8x1xf32> to vector<4x1xf32>
    %27 = vector.extract_strided_slice %16 {offsets = [4, 0], sizes = [4, 1], strides = [1, 1]} : vector<8x1xf32> to vector<4x1xf32>
    %28 = arith.addf %26, %27 : vector<4x1xf32>
    %cst_9 = arith.constant 0.001953125 : f32
    %29 = vector.broadcast %cst_9 : f32 to vector<4x1xf32>
    %30 = arith.mulf %19, %29 : vector<4x1xf32>
    %cst_10 = arith.constant 0.001953125 : f32
    %31 = vector.broadcast %cst_10 : f32 to vector<4x1xf32>
    %32 = arith.mulf %25, %31 : vector<4x1xf32>
    %33 = arith.mulf %19, %30 : vector<4x1xf32>
    %34 = arith.subf %22, %33 : vector<4x1xf32>
    %cst_11 = arith.constant 0.00195694715 : f32
    %35 = vector.broadcast %cst_11 : f32 to vector<4x1xf32>
    %36 = arith.mulf %34, %35 : vector<4x1xf32>
    %37 = arith.mulf %25, %32 : vector<4x1xf32>
    %38 = arith.subf %28, %37 : vector<4x1xf32>
    %cst_12 = arith.constant 0.00195694715 : f32
    %39 = vector.broadcast %cst_12 : f32 to vector<4x1xf32>
    %40 = arith.mulf %38, %39 : vector<4x1xf32>
    %41 = math.sqrt %36 : vector<4x1xf32>
    %42 = math.rsqrt %40 : vector<4x1xf32>
    %43 = arith.mulf %41, %42 : vector<4x1xf32>
    %44 = arith.mulf %32, %43 : vector<4x1xf32>
    %45 = arith.subf %30, %44 : vector<4x1xf32>
    %46 = vector.extract_strided_slice %6 {offsets = [0, 0], sizes = [4, 256], strides = [1, 1]} : vector<8x256xf32> to vector<4x256xf32>
    %47 = vector.broadcast %43 : vector<4x1xf32> to vector<4x256xf32>
    %48 = arith.mulf %46, %47 : vector<4x256xf32>
    %49 = vector.broadcast %45 : vector<4x1xf32> to vector<4x256xf32>
    %50 = arith.addf %48, %49 : vector<4x256xf32>
    %cst_13 = arith.constant 0.000000e+00 : f32
    %cst_14 = arith.constant 1.000000e+00 : f32
    %51 = vector.broadcast %cst_13 : f32 to vector<4x256xf32>
    %52 = arith.maximumf %51, %50 : vector<4x256xf32>
    %53 = vector.broadcast %cst_14 : f32 to vector<4x256xf32>
    %54 = arith.minimumf %53, %52 : vector<4x256xf32>
    %c0_15 = arith.constant 0 : index
    %c0_16 = arith.constant 0 : index
    %55 = vector.load %arg4[%c0_15, %c0_16] : memref<8x256xf32, #tpu.memory_space<vmem>>, vector<4x256xf32>
    tpu.vector_store %arg4[%c0_15, %c0_16], %54 {strides = array<i32>} : memref<8x256xf32, #tpu.memory_space<vmem>>, vector<4x256xf32>,
    %56 = vector.extract_strided_slice %6 {offsets = [4, 0], sizes = [4, 256], strides = [1, 1]} : vector<8x256xf32> to vector<4x256xf32>
    %57 = vector.broadcast %43 : vector<4x1xf32> to vector<4x256xf32>
    %58 = arith.mulf %56, %57 : vector<4x256xf32>
    %59 = vector.broadcast %45 : vector<4x1xf32> to vector<4x256xf32>
    %60 = arith.addf %58, %59 : vector<4x256xf32>
    %cst_17 = arith.constant 0.000000e+00 : f32
    %cst_18 = arith.constant 1.000000e+00 : f32
    %61 = vector.broadcast %cst_17 : f32 to vector<4x256xf32>
    %62 = arith.maximumf %61, %60 : vector<4x256xf32>
    %63 = vector.broadcast %cst_18 : f32 to vector<4x256xf32>
    %64 = arith.minimumf %63, %62 : vector<4x256xf32>
    %c4 = arith.constant 4 : index
    %c0_19 = arith.constant 0 : index
    %65 = vector.load %arg4[%c4, %c0_19] : memref<8x256xf32, #tpu.memory_space<vmem>>, vector<4x256xf32>
    tpu.vector_store %arg4[%c4, %c0_19], %64 {strides = array<i32>} : memref<8x256xf32, #tpu.memory_space<vmem>>, vector<4x256xf32>,
    return
  }
  func.func @transform_0(%arg0: i32) -> (i32, i32) {
    %c0_i32 = arith.constant 0 : i32
    %c0_i32_0 = arith.constant 0 : i32
    %c0_i32_1 = arith.constant 0 : i32
    return %c0_i32, %c0_i32_0 : i32, i32
  }
  func.func @transform_1(%arg0: i32) -> (i32, i32) {
    %c0_i32 = arith.constant 0 : i32
    %c0_i32_0 = arith.constant 0 : i32
    %c0_i32_1 = arith.constant 0 : i32
    return %c0_i32, %c0_i32_0 : i32, i32
  }
  func.func @transform_2(%arg0: i32) -> (i32, i32) {
    %c0_i32 = arith.constant 0 : i32
    %c0_i32_0 = arith.constant 0 : i32
    %c0_i32_1 = arith.constant 0 : i32
    return %c0_i32, %c0_i32_0 : i32, i32
  }
  func.func @transform_3(%arg0: i32) -> (i32, i32) {
    %c0_i32 = arith.constant 0 : i32
    %c0_i32_0 = arith.constant 0 : i32
    %c0_i32_1 = arith.constant 0 : i32
    return %c0_i32, %c0_i32_0 : i32, i32
  }
}

</mosaic_0001>

<bundles_post_ra>
// kernel: forward.1
= control target key start
LH: loop header
LB: loop body
LE: loop exit
PB: predicated region body
PF: predicated region fallthrough
CT: control target
= control target key end

     0   :  { %8 = vsyncpa [#allocation3], 0  ;;  %s326_s15 = smov [#allocation2]   ;;  %s327_s17 = smov 256   ;;  %s388_s0 = inlined_call_operand.vmem [shape: f32[8,256], index: 0, kind: input, shape index: {}]   ;;  %s389_s1 = inlined_call_operand.hbm [shape: f32[256,256], index: 1, kind: input, shape index: {}]   ;;  %s390_s2 = inlined_call_operand.vmem [shape: f32[1,256], index: 2, kind: input, shape index: {}]   ;;  %s391_s3 = inlined_call_operand.vmem [shape: f32[8,256], index: 3, kind: output, shape index: {}]  }
   0x1   :  { %s15_s14 = sshll.u32 %s389_s1, 4  ;;  %s17_s16 = sshll.u32 %s326_s15, 4  ;;  %s16_s14 = int_to_ptr.hbm [resolvable:$true] %s15_s14  ;;  %s18_s16 = int_to_ptr.vmem [resolvable:$true] %s17_s16 }
   0x2   :  { %s328_s18 = smov 16  }
   0x3   :  { %23 = dma.hbm_to_vmem [thread:$0]  %s16_s14, 8192, %s18_s16, [#allocation3], %s327_s17, %s327_s17, %s328_s18  }
   0x4   :  { %324 = dma.done.wait [#allocation3], 8192  }
   0x5   :  { %325 = vsyncadd [#allocation3], 4294959104  ;;  %v71_v0 = vld [vmem:[#allocation2 + $0xf8] sm:$0xff]  ;;  %v69_v2 = vld [vmem:[#allocation2 + $0xe8] sm:$0xff] }
   0x6   :  { %v103_v1 = vld [vmem:[#allocation2 + $0x1f8] sm:$0xff]  ;;  %144 = vmatpush.msra.mxu2 %v71_v0  ;;  %v101_v3 = vld [vmem:[#allocation2 + $0x1e8] sm:$0xff]  ;;  %v70_v6 = vld [vmem:[#allocation2 + $0xf0] sm:$0xff] }
   0x7   :  { %164 = vmatpush.msra.mxu3 %v103_v1  ;;  %v67_v4 = vld [vmem:[#allocation2 + $0xd8] sm:$0xff]  ;;  %v102_v7 = vld [vmem:[#allocation2 + $0x1f0] sm:$0xff]  ;;  %v68_v8 = vld [vmem:[#allocation2 + $0xe0] sm:$0xff]  ;;  %104 = vmatpush.msra.mxu0 %v70_v6 }
   0x8   :  { %v99_v5 = vld [vmem:[#allocation2 + $0x1d8] sm:$0xff]  ;;  %145 = vmatpush.msra.mxu2 %v69_v2  ;;  %v100_v9 = vld [vmem:[#allocation2 + $0x1e0] sm:$0xff]  ;;  %124 = vmatpush.msra.mxu1 %v102_v7  ;;  %v65_v10 = vld [vmem:[#allocation2 + $0xc8] sm:$0xff] }
   0x9   :  { %165 = vmatpush.msra.mxu3 %v101_v3  ;;  %v97_v11 = vld [vmem:[#allocation2 + $0x1c8] sm:$0xff]  ;;  %v66_v12 = vld [vmem:[#allocation2 + $0xd0] sm:$0xff]  ;;  %105 = vmatpush.msra.mxu0 %v68_v8  ;;  %v63_v14 = vld [vmem:[#allocation2 + $0xb8] sm:$0xff] }
   0xa   :  { %146 = vmatpush.msra.mxu2 %v67_v4  ;;  %v98_v13 = vld [vmem:[#allocation2 + $0x1d0] sm:$0xff]  ;;  %125 = vmatpush.msra.mxu1 %v100_v9  ;;  %v95_v15 = vld [vmem:[#allocation2 + $0x1b8] sm:$0xff]  ;;  %v64_v16 = vld [vmem:[#allocation2 + $0xc0] sm:$0xff] }
   0xb   :  { %166 = vmatpush.msra.mxu3 %v99_v5  ;;  %v96_v17 = vld [vmem:[#allocation2 + $0x1c0] sm:$0xff]  ;;  %106 = vmatpush.msra.mxu0 %v66_v12  ;;  %v61_v18 = vld [vmem:[#allocation2 + $0xa8] sm:$0xff]  ;;  %v62_v20 = vld [vmem:[#allocation2 + $0xb0] sm:$0xff] }
   0xc   :  { %147 = vmatpush.msra.mxu2 %v65_v10  ;;  %126 = vmatpush.msra.mxu1 %v98_v13  ;;  %v93_v19 = vld [vmem:[#allocation2 + $0x1a8] sm:$0xff]  ;;  %v94_v21 = vld [vmem:[#allocation2 + $0x1b0] sm:$0xff]  ;;  %v59_v22 = vld [vmem:[#allocation2 + $0x98] sm:$0xff] }
   0xd   :  { %167 = vmatpush.msra.mxu3 %v97_v11  ;;  %107 = vmatpush.msra.mxu0 %v64_v16  ;;  %v91_v23 = vld [vmem:[#allocation2 + $0x198] sm:$0xff]  ;;  %v60_v24 = vld [vmem:[#allocation2 + $0xa0] sm:$0xff]  ;;  %v57_v26 = vld [vmem:[#allocation2 + $0x88] sm:$0xff] }
   0xe   :  { %148 = vmatpush.msra.mxu2 %v63_v14  ;;  %127 = vmatpush.msra.mxu1 %v96_v17  ;;  %v92_v25 = vld [vmem:[#allocation2 + $0x1a0] sm:$0xff]  ;;  %v89_v27 = vld [vmem:[#allocation2 + $0x188] sm:$0xff]  ;;  %v58_v28 = vld [vmem:[#allocation2 + $0x90] sm:$0xff] }
   0xf   :  { %168 = vmatpush.msra.mxu3 %v95_v15  ;;  %108 = vmatpush.msra.mxu0 %v62_v20  ;;  %v90_v29 = vld [vmem:[#allocation2 + $0x190] sm:$0xff]  ;;  %v55_v30 = vld [vmem:[#allocation2 + $0x78] sm:$0xff]  ;;  %v56_v32 = vld [vmem:[#allocation2 + $0x80] sm:$0xff] }
  0x10   :  { %149 = vmatpush.msra.mxu2 %v61_v18  ;;  %128 = vmatpush.msra.mxu1 %v94_v21  ;;  %v87_v31 = vld [vmem:[#allocation2 + $0x178] sm:$0xff]  ;;  %v88_v33 = vld [vmem:[#allocation2 + $0x180] sm:$0xff]  ;;  %v53_v34 = vld [vmem:[#allocation2 + $0x68] sm:$0xff] }
  0x11   :  { %169 = vmatpush.msra.mxu3 %v93_v19  ;;  %109 = vmatpush.msra.mxu0 %v60_v24  ;;  %v85_v35 = vld [vmem:[#allocation2 + $0x168] sm:$0xff]  ;;  %v54_v36 = vld [vmem:[#allocation2 + $0x70] sm:$0xff]  ;;  %v51_v38 = vld [vmem:[#allocation2 + $0x58] sm:$0xff] }
  0x12   :  { %150 = vmatpush.msra.mxu2 %v59_v22  ;;  %129 = vmatpush.msra.mxu1 %v92_v25  ;;  %v86_v37 = vld [vmem:[#allocation2 + $0x170] sm:$0xff]  ;;  %v83_v39 = vld [vmem:[#allocation2 + $0x158] sm:$0xff]  ;;  %v52_v40 = vld [vmem:[#allocation2 + $0x60] sm:$0xff] }
  0x13   :  { %170 = vmatpush.msra.mxu3 %v91_v23  ;;  %110 = vmatpush.msra.mxu0 %v58_v28  ;;  %v84_v41 = vld [vmem:[#allocation2 + $0x160] sm:$0xff]  ;;  %v49_v42 = vld [vmem:[#allocation2 + $0x48] sm:$0xff]  ;;  %v50_v44 = vld [vmem:[#allocation2 + $0x50] sm:$0xff] }
  0x14   :  { %151 = vmatpush.msra.mxu2 %v57_v26  ;;  %130 = vmatpush.msra.mxu1 %v90_v29  ;;  %v81_v43 = vld [vmem:[#allocation2 + $0x148] sm:$0xff]  ;;  %v82_v45 = vld [vmem:[#allocation2 + $0x150] sm:$0xff]  ;;  %v47_v46 = vld [vmem:[#allocation2 + $0x38] sm:$0xff] }
  0x15   :  { %171 = vmatpush.msra.mxu3 %v89_v27  ;;  %111 = vmatpush.msra.mxu0 %v56_v32  ;;  %v79_v47 = vld [vmem:[#allocation2 + $0x138] sm:$0xff]  ;;  %v48_v48 = vld [vmem:[#allocation2 + $0x40] sm:$0xff]  ;;  %v45_v50 = vld [vmem:[#allocation2 + $0x28] sm:$0xff] }
  0x16   :  { %152 = vmatpush.msra.mxu2 %v55_v30  ;;  %131 = vmatpush.msra.mxu1 %v88_v33  ;;  %v80_v49 = vld [vmem:[#allocation2 + $0x140] sm:$0xff]  ;;  %v77_v51 = vld [vmem:[#allocation2 + $0x128] sm:$0xff]  ;;  %v46_v52 = vld [vmem:[#allocation2 + $0x30] sm:$0xff]  ;;  %v329_v33 = vmov 0  }
  0x17   :  { %172 = vmatpush.msra.mxu3 %v87_v31  ;;  %112 = vmatpush.msra.mxu0 %v54_v36  ;;  %v78_v53 = vld [vmem:[#allocation2 + $0x130] sm:$0xff]  ;;  %v30_v54 = vld [vmem:[%s388_s0] sm:$0xff]  ;;  %v31_v55 = vld [vmem:[%s388_s0 + $0x8] sm:$0xff] }
  0x18   :  { %153 = vmatpush.msra.mxu2 %v53_v34  ;;  %132 = vmatpush.msra.mxu1 %v86_v37  ;;  %v43_v56 = vld [vmem:[#allocation2 + $0x18] sm:$0xff]  ;;  %v189_v58 = vmul.f32 %v30_v54, %v30_v54  ;;  %v190_v59 = vmul.f32 %v31_v55, %v31_v55  ;;  %v44_v60 = vld [vmem:[#allocation2 + $0x20] sm:$0xff]  ;;  %v41_v62 = vld [vmem:[#allocation2 + $0x8] sm:$0xff]  ;;  %v186_v2 = vadd.f32 %v31_v55, %v30_v54 }
  0x19   :  { %173 = vmatpush.msra.mxu3 %v85_v35  ;;  %113 = vmatpush.msra.mxu0 %v52_v40  ;;  %v75_v57 = vld [vmem:[#allocation2 + $0x118] sm:$0xff]  ;;  %v76_v61 = vld [vmem:[#allocation2 + $0x120] sm:$0xff]  ;;  %v73_v63 = vld [vmem:[#allocation2 + $0x108] sm:$0xff] }
  0x1a   :  { %154 = vmatpush.msra.mxu2 %v51_v38  ;;  %133 = vmatpush.msra.mxu1 %v84_v41  ;;  %v42_v0 = vld [vmem:[#allocation2 + $0x10] sm:$0xff]  ;;  %v191_v3 = vadd.f32 %v190_v59, %v189_v58  ;;  %v40_v4 = vld [vmem:[#allocation2] sm:$0xff] }
  0x1b   :  { %174 = vmatpush.msra.mxu3 %v83_v39  ;;  %114 = vmatpush.msra.mxu0 %v50_v44  ;;  %v74_v1 = vld [vmem:[#allocation2 + $0x110] sm:$0xff]  ;;  %v72_v5 = vld [vmem:[#allocation2 + $0x100] sm:$0xff] }
  0x1c   :  { %155 = vmatpush.msra.mxu2 %v49_v42  ;;  %134 = vmatpush.msra.mxu1 %v82_v45  ;;  %v32_v6 = vld [vmem:[%s390_s2] sm:$0x3] }
  0x1d   :  { %175 = vmatpush.msra.mxu3 %v81_v43  ;;  %115 = vmatpush.msra.mxu0 %v48_v48  ;;  %v34_v7 = vperm.slane %v32_v6, 0  ;;  %v35_v8 = vperm.slane %v32_v6, 1 }
  0x1e   :  { %156 = vmatpush.msra.mxu2 %v47_v46  ;;  %135 = vmatpush.msra.mxu1 %v80_v49 }
  0x1f   :  { %176 = vmatpush.msra.mxu3 %v79_v47  ;;  %116 = vmatpush.msra.mxu0 %v46_v52  ;;  %v38_v9 = vmul.f32 %v34_v7, %v30_v54  ;;  %v39_v13 = vmul.f32 %v35_v8, %v31_v55 }
  0x20   :  { %157 = vmatpush.msra.mxu2 %v45_v50  ;;  %136 = vmatpush.msra.mxu1 %v78_v53 }
  0x21   :  { %177 = vmatpush.msra.mxu3 %v77_v51  ;;  %117 = vmatpush.msra.mxu0 %v44_v60 }
  0x22   :  { %158 = vmatpush.msra.mxu2 %v43_v56  ;;  %137 = vmatpush.msra.mxu1 %v76_v61 }
  0x23   :  { %178 = vmatpush.msra.mxu3 %v75_v57  ;;  %118 = vmatpush.msra.mxu0 %v42_v0 }
  0x24   :  { %159 = vmatpush.msra.mxu2 %v41_v62  ;;  %138 = vmatpush.msra.mxu1 %v74_v1 }
  0x25   :  { %179 = vmatpush.msra.mxu3 %v73_v63  ;;  %160 = vmatmul.f32.vlgmr.msra.gmra.mxu2 %v30_v54 }
  0x26   :  { %180 = vmatmul.f32.vlgmr.msra.gmra.mxu3 %v31_v55  ;;  %187 = vadd.xlane.f32.xlu0 %v186_v2 }
  0x27   :  { %192 = vadd.xlane.f32.xlu1 %v191_v3  ;;  %119 = vmatpush.msra.mxu0 %v40_v4 }
  0x28   :  { %139 = vmatpush.msra.mxu1 %v72_v5  ;;  %120 = vmatmul.f32.vlgmr.msra.gmra.mxu0 %v30_v54 }
  0x29   :  { %140 = vmatmul.f32.vlgmr.msra.gmra.mxu1 %v31_v55  ;;  %294 = vset.pattern.permute.xlu2 %v329_v33 }
  0x2a   :  { %295 = vset.pattern.permute.xlu0 %v329_v33 }
  0x99   :  { %v188_v23 = vpop.xlane.xlu0 %187 }
  0x9a   :  { %v203_v24 = vrot.slane %v188_v23, 4  ;;  %v193_v26 = vpop.xlane.xlu1 %192 }
  0x9b   :  { %v207_v28 = vrot.slane %v193_v26, 4 }
  0x9c   :  { %v205_v25 = vadd.f32 %v203_v24, %v188_v23 }
  0x9d   :  { %v209_v30 = vadd.f32 %v207_v28, %v193_v26 }
  0x9e   :  { %v218_v27 = vmul.f32 0.001953125, %v205_v25 }
  0xa0   :  { %v220_v29 = vmul.f32 %v218_v27, %v205_v25 }
  0xa2   :  { %v221_v31 = vsub.f32 %v209_v30, %v220_v29 }
  0xa4   :  { %v222_v32 = vmul.f32 0.0019569471, %v221_v31 }
  0xa5   :  { %v121_v10 = vpop.f32.mrf.mxu0 }
  0xa6   :  { %v141_v11 = vpop.f32.mrf.mxu1  ;;  %296 = vrsqrt.f32 %v222_v32  ;;  %vm233_vm0 = vcmp.eq.f32.partialorder %v222_v32, inf  ;;  %v236_v55 = vand.u32 2147483648, %v222_v32  ;;  %vm235_vm2 = vcmp.eq.f32.partialorder %v222_v32, 0.0 }
  0xa7   :  { %v142_v12 = vadd.f32 %v141_v11, %v121_v10 }
  0xa8   :  { %v161_v14 = vpop.f32.mrf.mxu2 }
  0xa9   :  { %v181_v15 = vpop.f32.mrf.mxu3  ;;  %v362_v16 = vadd.f32 %v142_v12, %v38_v9 }
  0xaa   :  { %v182_v17 = vadd.f32 %v181_v15, %v161_v14 }
  0xab   :  { %v197_v19 = vmul.f32 %v362_v16, %v362_v16 }
  0xac   :  { %v364_v18 = vadd.f32 %v182_v17, %v39_v13  ;;  %v297_v34 = vpop.eup %296 }
  0xad   :  { %v227_v40 = vmul.f32 %v297_v34, %v222_v32 }
  0xae   :  { %v194_v20 = vadd.f32 %v364_v18, %v362_v16  ;;  %v198_v21 = vmul.f32 %v364_v18, %v364_v18 }
  0xaf   :  { %v228_v44 = vmul.f32 %v297_v34, %v227_v40 }
  0xb0   :  { %195 = vadd.xlane.f32.xlu0 %v194_v20  ;;  %v199_v22 = vadd.f32 %v198_v21, %v197_v19 }
  0xb1   :  { %v229_v47 = vmul.f32 0.5, %v228_v44 }
  0xb2   :  { %200 = vadd.xlane.f32.xlu1 %v199_v22 }
  0xb3   :  { %v230_v48 = vsub.f32 1.5, %v229_v47 }
  0xb5   :  { %v231_v50 = vmul.f32 %v297_v34, %v230_v48 }
  0xb7   :  { %v232_v53 = vmul.f32 %v231_v50, %v222_v32 }
  0xb9   :  { %v234_v57 = vsel %vm233_vm0, %v222_v32, %v232_v53 }
  0xba   :  { %v237_v59 = vsel %vm235_vm2, %v236_v55, %v234_v57 }
 0x123   :  { %v196_v35 = vpop.xlane.xlu0 %195 }
 0x124   :  { %v211_v36 = vrot.slane %v196_v35, 4 }
 0x125   :  { %v201_v37 = vpop.xlane.xlu1 %200 }
 0x126   :  { %v213_v38 = vadd.f32 %v211_v36, %v196_v35  ;;  %v215_v39 = vrot.slane %v201_v37, 4 }
 0x128   :  { %v219_v41 = vmul.f32 0.001953125, %v213_v38  ;;  %v217_v43 = vadd.f32 %v215_v39, %v201_v37 }
 0x12a   :  { %v223_v42 = vmul.f32 %v219_v41, %v213_v38 }
 0x12c   :  { %v224_v45 = vsub.f32 %v217_v43, %v223_v42 }
 0x12e   :  { %v225_v46 = vmul.f32 0.0019569471, %v224_v45 }
 0x130   :  { %298 = vrsqrt.f32 %v225_v46  ;;  %vm244_vm3 = vweird.f32 %v225_v46 }
 0x136   :  { %v299_v49 = vpop.eup %298 }
 0x137   :  { %v239_v51 = vmul.f32 %v299_v49, %v225_v46  ;;  %vm245_vm1 = vweird.f32 %v299_v49 }
 0x138   :  { %vm246_vm4 = vmor %vm244_vm3, %vm245_vm1 }
 0x139   :  { %v240_v52 = vmul.f32 %v299_v49, %v239_v51 }
 0x13b   :  { %v241_v54 = vmul.f32 0.5, %v240_v52 }
 0x13d   :  { %v242_v56 = vsub.f32 1.5, %v241_v54 }
 0x13f   :  { %v243_v58 = vmul.f32 %v299_v49, %v242_v56 }
 0x141   :  { %v247_v60 = vsel %vm246_vm4, %v299_v49, %v243_v58 }
 0x142   :  { %v248_v61 = vmul.f32 %v247_v60, %v237_v59 }
 0x144   :  { %253 = vperm.xlu2 %294, %v248_v61   ;;  %v249_v62 = vmul.f32 %v248_v61, %v219_v41 }
 0x146   :  { %v250_v63 = vsub.f32 %v218_v27, %v249_v62 }
 0x14c   :  { %260 = vperm.xlu2 %294, %v250_v63  }
 0x19e   :  { %v254_v0 = vpop.permute.xlu2 %253 }
 0x19f   :  { %v271_v1 = vrot.slane %v254_v0, 4  ;;  %v256_v2 = vmul.f32 %v254_v0, %v362_v16  ;;  %v257_v3 = vmul.f32 %v254_v0, %v364_v18 }
 0x1a1   :  { %v273_v4 = vmul.f32 %v271_v1, %v362_v16  ;;  %v274_v6 = vmul.f32 %v271_v1, %v364_v18 }
 0x1a6   :  { %v261_v5 = vpop.permute.xlu2 %260 }
 0x1a7   :  { %v263_v7 = vadd.f32 %v261_v5, %v256_v2  ;;  %v264_v8 = vadd.f32 %v261_v5, %v257_v3  ;;  %v275_v9 = vrot.slane %v261_v5, 4 }
 0x1a9   :  { %v265_v10 = vmax.f32 %v263_v7, 0.0  ;;  %v266_v11 = vmax.f32 %v264_v8, 0.0  ;;  %v277_v12 = vadd.f32 %v275_v9, %v273_v4  ;;  %v278_v13 = vadd.f32 %v275_v9, %v274_v6 }
 0x1ab   :  { %v267_v14 = vmin.f32 %v265_v10, 1.0  ;;  %v268_v15 = vmin.f32 %v266_v11, 1.0  ;;  %v279_v17 = vmax.f32 %v277_v12, 0.0  ;;  %v280_v19 = vmax.f32 %v278_v13, 0.0 }
 0x1ad   :  { %269 = vst [vmem:[%s391_s3] sm:$0xf] %v267_v14  ;;  %v281_v20 = vmin.f32 %v279_v17, 1.0  ;;  %v282_v16 = vmin.f32 %v280_v19, 1.0 }
 0x1ae   :  { %270 = vst [vmem:[%s391_s3 + $0x8] sm:$0xf] %v268_v15 }
 0x1af   :  { %283 = vst [vmem:[%s391_s3] sm:$0xf0] %v281_v20 }
 0x1b0   :  { %284 = vst [vmem:[%s391_s3 + $0x8] sm:$0xf0] %v282_v16 }
 0x1b1   :  { %289 = vsyncpa [#allocation3], 1 }

</bundles_post_ra>
